<compile_context>
chip_gen: v5e
topology: v5e:2x2
jax: 0.10.0
libtpu: 0.0.40
codegen_flags: <defaults>
</compile_context>

<pallas_src>
import functools

import jax
import jax.numpy as jnp
from jax.experimental import pallas as pl
from jax.experimental.pallas import tpu as pltpu

LANES = 128  # f32 lane width / lane-dense output width


def _round_up(x, m):
    return ((x + m - 1) // m) * m


def _layout(state_size, hidden, action_size):
    """Row layout of the packed parameter slab (all offsets 8-sublane aligned)."""
    assert hidden <= LANES and action_size + 1 <= LANES
    s_pad = max(8, _round_up(state_size, 8))       # W1 block rows (K of matmul 1)
    b1_row = s_pad                                 # 8-aligned bias row
    head_w_off = _round_up(b1_row + 1, 8)          # start of (128, 128) head block
    head_b_row = head_w_off + LANES                # 8-aligned head-bias row
    n_rows = _round_up(head_b_row + 1, 8)
    return dict(state_size=state_size, hidden=hidden, action_size=action_size,
                s_pad=s_pad, b1_row=b1_row, head_w_off=head_w_off,
                head_b_row=head_b_row, n_rows=n_rows)


def pack_params(params):
    """Pack W1/b1 and the fused (policy|value) head into one (n_rows, 128) f32 slab.

    Done once at init time so every forward issues only 2 input operands.
    Kept in f32 on purpose (slab is ~76 KB; the kernel is overhead-bound, and
    v5e has no bf16 VPU path) — do not down-cast.
    """
    w1 = params["w1"].astype(jnp.float32)                               # (S, H)
    b1 = params["b1"].astype(jnp.float32).reshape(-1)                   # (H,)
    wh = jnp.concatenate([params["wp"], params["wv"]], axis=1)          # (H, A+1)
    bh = jnp.concatenate([params["bp"], params["bv"]], axis=1).reshape(-1)

    S, H = w1.shape
    A = wh.shape[1] - 1
    lay = _layout(S, H, A)

    P = jnp.zeros((lay["n_rows"], LANES), jnp.float32)
    # rows [0, s_pad): zero-padded W1 block — MXU LHS K dim padded to 8.
    P = P.at[0:S, 0:H].set(w1)
    # row b1_row: hidden bias.
    P = P.at[lay["b1_row"], 0:H].set(b1)
    # rows [head_w_off, head_w_off+128): zero-padded fused head weight block.
    P = P.at[lay["head_w_off"]:lay["head_w_off"] + H, 0:A + 1].set(
        wh.astype(jnp.float32))
    # row head_b_row: fused head bias (policy biases | value bias).
    P = P.at[lay["head_b_row"], 0:A + 1].set(bh.astype(jnp.float32))

    return dict(P=P, **lay)


def _make_kernel(s_pad, b1_row, head_w_off, head_b_row):
    def kernel(state_ref, params_ref, out_ref):
        x = state_ref[...]                                      # (TILE_B, s_pad)
        p = params_ref                                          # (n_rows, 128) slab

        # ---- hidden layer on the MXU: ReLU(x @ W1_pad + b1) ----
        w1 = p[0:s_pad, :]                                      # (s_pad, 128)
        b1 = p[b1_row:b1_row + 1, :]                            # (1, 128)
        h = jnp.dot(x, w1, preferred_element_type=jnp.float32) + b1
        h = jnp.maximum(h, 0.0)                                 # (TILE_B, 128)
        # lanes >= hidden are exactly 0 (zero weights + zero bias), so the full
        # 128-lane h feeds the zero-padded head block with no lane slicing.

        # ---- fused policy+value head: one lane-dense (128, 128) matmul ----
        wh = p[head_w_off:head_w_off + LANES, :]                # (128, 128)
        bh = p[head_b_row:head_b_row + 1, :]                    # (1, 128)
        out = jnp.dot(h, wh, preferred_element_type=jnp.float32) + bh
        out_ref[...] = out.astype(out_ref.dtype)                # unmasked vst

    return kernel


@functools.lru_cache(maxsize=None)
def _build_forward_slab(state_size, hidden, action_size, tile_b):
    """Build + jit the zero-wrapper-HLO forward: (Bp, s_pad) states -> (Bp, 128) slab."""
    lay = _layout(state_size, hidden, action_size)
    kernel = _make_kernel(lay["s_pad"], lay["b1_row"],
                          lay["head_w_off"], lay["head_b_row"])
    s_pad, n_rows = lay["s_pad"], lay["n_rows"]

    def fwd(state_padded, P):
        Bp = state_padded.shape[0]
        assert Bp % tile_b == 0 and tile_b % 8 == 0
        return pl.pallas_call(
            kernel,
            out_shape=jax.ShapeDtypeStruct((Bp, LANES), jnp.float32),
            grid=(Bp // tile_b,),
            in_specs=[
                pl.BlockSpec((tile_b, s_pad), lambda i: (i, 0)),
                # same block index every step -> param slab stays VMEM-resident
                pl.BlockSpec((n_rows, LANES), lambda i: (0, 0)),
            ],
            out_specs=pl.BlockSpec((tile_b, LANES), lambda i: (i, 0)),
            compiler_params=pltpu.CompilerParams(
                dimension_semantics=("parallel",)),  # dual-TC split on v7x
        )(state_padded, P)

    return jax.jit(fwd)


def pad_states(state, batch_padded, s_pad):
    """One-time/owned-buffer padding of states to (Bp, s_pad). Keep this OUT of
    the per-step hot path: rollouts should write directly into such a buffer."""
    B, S = state.shape
    return jnp.zeros((batch_padded, s_pad), jnp.float32).at[:B, :S].set(
        state.astype(jnp.float32))


def actor_critic_forward_slab(state_padded, packed, tile_b):
    """Hot path: pre-padded (Bp, s_pad) states -> lane-dense (Bp, 128) output slab.
    Lanes [0, A) = policy logits, lane A = value; rows >= B are padding."""
    fwd = _build_forward_slab(packed["state_size"], packed["hidden"],
                              packed["action_size"], tile_b)
    return fwd(state_padded, packed["P"])


def actor_critic_forward(state, packed, tile_b=None):
    """Convenience wrapper matching the PyTorch forward: (policy_logits, value)."""
    B = state.shape[0]
    A = packed["action_size"]
    if tile_b is None:
        # >= 256 rows per MXU pass once the batch is big (v6e/v7x 256-wide MXU).
        tile_b = 256 if B >= 256 else max(8, _round_up(B, 8))
    Bp = _round_up(max(B, tile_b), tile_b)
    state_p = pad_states(state, Bp, packed["s_pad"])
    slab = actor_critic_forward_slab(state_p, packed, tile_b)
    return slab[:B, :A], slab[:B, A:A + 1]


def init_params(key, state_size, action_size, hidden=32):
    """Deterministic PyTorch-style Linear init: U(-1/sqrt(fan_in), 1/sqrt(fan_in))."""
    def linear(k, fan_in, fan_out):
        kw, kb = jax.random.split(k)
        bound = 1.0 / jnp.sqrt(jnp.float32(fan_in))
        w = jax.random.uniform(kw, (fan_in, fan_out), jnp.float32, -bound, bound)
        b = jax.random.uniform(kb, (1, fan_out), jnp.float32, -bound, bound)
        return w, b

    k1, k2, k3 = jax.random.split(key, 3)
    w1, b1 = linear(k1, state_size, hidden)
    wp, bp = linear(k2, hidden, action_size)
    wv, bv = linear(k3, hidden, 1)
    return {"w1": w1, "b1": b1, "wp": wp, "bp": bp, "wv": wv, "bv": bv}


def reference_forward(state, params):
    """Plain-JAX reference mirroring the PyTorch forward."""
    h = jnp.maximum(state @ params["w1"] + params["b1"], 0.0)
    return h @ params["wp"] + params["bp"], h @ params["wv"] + params["bv"]


if __name__ == "__main__":
    # CartPole-v1: state_size = 4, action_size = 2
    B, STATE_SIZE, ACTION_SIZE, HIDDEN = 2, 4, 2, 32

    key = jax.random.PRNGKey(0)
    k_params, k_state = jax.random.split(key)

    params = init_params(k_params, STATE_SIZE, ACTION_SIZE, HIDDEN)
    packed = pack_params(params)  # one-time parameter packing (init-time cost)
    state = jax.random.normal(k_state, (B, STATE_SIZE), jnp.float32)

    # Small-batch path (grid = 1 tile).
    policy_logits, value = actor_critic_forward(state, packed)
    jax.block_until_ready((policy_logits, value))

    ref_policy, ref_value = reference_forward(state, params)
    assert policy_logits.shape == (B, ACTION_SIZE)
    assert value.shape == (B, 1)
    assert jnp.allclose(policy_logits, ref_policy, atol=1e-5, rtol=1e-5)
    assert jnp.allclose(value, ref_value, atol=1e-5, rtol=1e-5)

    # Batch-tiled path: grid of 3 tiles, param slab VMEM-resident across tiles,
    # demonstrating the zero-wrapper-HLO hot path on a pre-padded buffer.
    B2, TILE_B2 = 48, 16
    state2 = jax.random.normal(jax.random.PRNGKey(1), (B2, STATE_SIZE), jnp.float32)
    state2_padded = pad_states(state2, _round_up(B2, TILE_B2), packed["s_pad"])
    slab2 = actor_critic_forward_slab(state2_padded, packed, TILE_B2)
    jax.block_until_ready(slab2)
    ref_p2, ref_v2 = reference_forward(state2, params)
    assert jnp.allclose(slab2[:B2, :ACTION_SIZE], ref_p2, atol=1e-5, rtol=1e-5)
    assert jnp.allclose(slab2[:B2, ACTION_SIZE:ACTION_SIZE + 1], ref_v2,
                        atol=1e-5, rtol=1e-5)

    print("KERNEL_OK")
</pallas_src>

<mosaic_0001>
module attributes {stable_mosaic.version = 11 : i64} {
  func.func @kernel(%arg0: i32, %arg1: memref<8x8xf32, #tpu.memory_space<vmem>>, %arg2: memref<152x128xf32, #tpu.memory_space<vmem>>, %arg3: memref<8x128xf32, #tpu.memory_space<vmem>>) attributes {dimension_semantics = [#tpu.dimension_semantics<parallel>], iteration_bounds = array<i64: 1>, scalar_prefetch = 0 : i64, scratch_operands = 0 : i64, tpu.core_type = #tpu.core_type<tc>, window_params = [{transform_indices = @transform_0, window_bounds = array<i64: 8, 8>}, {pipeline_mode = #tpu.pipeline_mode<synchronous>, transform_indices = @transform_1, window_bounds = array<i64: 152, 128>}, {transform_indices = @transform_2, window_bounds = array<i64: 8, 128>}]} {
    %c0 = arith.constant 0 : index
    %c0_0 = arith.constant 0 : index
    %0 = vector.load %arg1[%c0, %c0_0] : memref<8x8xf32, #tpu.memory_space<vmem>>, vector<8x8xf32>
    %c0_1 = arith.constant 0 : index
    %c0_2 = arith.constant 0 : index
    %1 = vector.load %arg2[%c0_1, %c0_2] : memref<152x128xf32, #tpu.memory_space<vmem>>, vector<8x128xf32>
    %c8 = arith.constant 8 : index
    %c0_3 = arith.constant 0 : index
    %2 = vector.load %arg2[%c8, %c0_3] : memref<152x128xf32, #tpu.memory_space<vmem>>, vector<1x128xf32>
    %cst = arith.constant dense<0.000000e+00> : vector<8x128xf32>
    %3 = tpu.matmul %0, %1, %cst {dimension_numbers = #tpu.dot_dimension_numbers<[1], [0], [0], [1], [0, 0, 1, 1], [], []>} : vector<8x8xf32>, vector<8x128xf32>, vector<8x128xf32> -> vector<8x128xf32>
    %4 = vector.broadcast %2 : vector<1x128xf32> to vector<8x128xf32>
    %5 = arith.addf %3, %4 : vector<8x128xf32>
    %cst_4 = arith.constant 0.000000e+00 : f32
    %6 = vector.broadcast %cst_4 : f32 to vector<8x128xf32>
    %7 = arith.maximumf %5, %6 : vector<8x128xf32>
    %c16 = arith.constant 16 : index
    %c0_5 = arith.constant 0 : index
    %8 = vector.load %arg2[%c16, %c0_5] : memref<152x128xf32, #tpu.memory_space<vmem>>, vector<128x128xf32>
    %c144 = arith.constant 144 : index
    %c0_6 = arith.constant 0 : index
    %9 = vector.load %arg2[%c144, %c0_6] : memref<152x128xf32, #tpu.memory_space<vmem>>, vector<1x128xf32>
    %cst_7 = arith.constant dense<0.000000e+00> : vector<8x128xf32>
    %10 = tpu.matmul %7, %8, %cst_7 {dimension_numbers = #tpu.dot_dimension_numbers<[1], [0], [0], [1], [0, 0, 1, 1], [], []>} : vector<8x128xf32>, vector<128x128xf32>, vector<8x128xf32> -> vector<8x128xf32>
    %11 = vector.broadcast %9 : vector<1x128xf32> to vector<8x128xf32>
    %12 = arith.addf %10, %11 : vector<8x128xf32>
    %c0_8 = arith.constant 0 : index
    %c0_9 = arith.constant 0 : index
    %13 = vector.load %arg3[%c0_8, %c0_9] : memref<8x128xf32, #tpu.memory_space<vmem>>, vector<8x128xf32>
    tpu.vector_store %arg3[%c0_8, %c0_9], %12 {strides = array<i32>} : memref<8x128xf32, #tpu.memory_space<vmem>>, vector<8x128xf32>,
    return
  }
  func.func @transform_0(%arg0: i32) -> (i32, i32) {
    %c0_i32 = arith.constant 0 : i32
    %c0_i32_0 = arith.constant 0 : i32
    return %arg0, %c0_i32 : i32, i32
  }
  func.func @transform_1(%arg0: i32) -> (i32, i32) {
    %c0_i32 = arith.constant 0 : i32
    %c0_i32_0 = arith.constant 0 : i32
    %c0_i32_1 = arith.constant 0 : i32
    return %c0_i32, %c0_i32_0 : i32, i32
  }
  func.func @transform_2(%arg0: i32) -> (i32, i32) {
    %c0_i32 = arith.constant 0 : i32
    %c0_i32_0 = arith.constant 0 : i32
    return %arg0, %c0_i32 : i32, i32
  }
}

</mosaic_0001>

<bundles_post_ra>
// kernel: fwd.1
= control target key start
LH: loop header
LB: loop body
LE: loop exit
PB: predicated region body
PF: predicated region fallthrough
CT: control target
= control target key end

     0   :  { %7 = vsyncpa [#allocation3], 0  ;;  %s243_s0 = inlined_call_operand.hbm [shape: f32[8,8], index: 0, kind: input, shape index: {}]   ;;  %s244_s1 = inlined_call_operand.hbm [shape: f32[152,128], index: 1, kind: input, shape index: {}]   ;;  %s245_s2 = inlined_call_operand.hbm [shape: f32[8,128], index: 2, kind: output, shape index: {}]  }
   0x1   :  { %8 = vsyncpa [#allocation6], 0 }
   0x2   :  { %9 = vsyncpa [#allocation4], 0  ;;  %s15_s11 = sshll.u32 %s243_s0, 4  ;;  %s214_s12 = smov [#allocation2]   ;;  %s16_s11 = int_to_ptr.hbm [resolvable:$true] %s15_s11 }
   0x3   :  { %s17_s13 = sshll.u32 %s214_s12, 4  ;;  %s25_s16 = sshll.u32 %s244_s1, 4  ;;  %s18_s13 = int_to_ptr.vmem [resolvable:$true] %s17_s13  ;;  %s26_s16 = int_to_ptr.hbm [resolvable:$true] %s25_s16 }
   0x4   :  { %20 = dma.hbm_to_vmem [thread:$0]  %s16_s11, 128, %s18_s13, [#allocation3]  }
   0x5   :  { %s215_s17 = smov [#allocation5]   ;;  %s216_s19 = smov 128  }
   0x6   :  { %s27_s18 = sshll.u32 %s215_s17, 4  ;;  %s217_s20 = smov 8   ;;  %s28_s18 = int_to_ptr.vmem [resolvable:$true] %s27_s18 }
   0x7   :  { %33 = dma.hbm_to_vmem [thread:$0]  %s26_s16, 2432, %s28_s18, [#allocation6], %s216_s19, %s216_s19, %s217_s20  }
   0x8   :  { %208 = dma.done.wait [#allocation3], 128  }
   0x9   :  { %209 = vsyncadd [#allocation3], 4294967168 }
   0xa   :  { %210 = dma.done.wait [#allocation6], 2432  }
   0xb   :  { %211 = vsyncadd [#allocation6], 4294964864  ;;  %vm46_vm0 = vcmask 64512   ;;  %v43_v0 = vld [vmem:[#allocation5] sm:$0xff]  ;;  %v42_v1 = vld [vmem:[#allocation2] sm:$0xff]  ;;  %s218_s0 = smov [#allocation7]  }
   0xc   :  { %v86_v2 = vld [vmem:[#allocation5 + $0x88] sm:$0xff]  ;;  %65 = vmatpush.msra.mxu0 %v43_v0  ;;  %v85_v3 = vld [vmem:[#allocation5 + $0x80] sm:$0xff]  ;;  %v84_v4 = vld [vmem:[#allocation5 + $0x78] sm:$0xff]  ;;  %s115_s1 = sshll.u32 %s218_s0, 4  ;;  %s117_s23 = sshll.u32 %s245_s2, 4  ;;  %s116_s1 = int_to_ptr.vmem [resolvable:$true] %s115_s1  ;;  %s118_s23 = int_to_ptr.hbm [resolvable:$true] %s117_s23 }
   0xd   :  { %89 = vmatpush.msra.mxu1 %v86_v2  ;;  %128 = vmatmul.msk.f32.vlgmr.msra.gmra.mxu0 %vm46_vm0, %v42_v1  ;;  %v83_v5 = vld [vmem:[#allocation5 + $0x70] sm:$0xff]  ;;  %v82_v6 = vld [vmem:[#allocation5 + $0x68] sm:$0xff]  ;;  %v81_v7 = vld [vmem:[#allocation5 + $0x60] sm:$0xff] }
   0xe   :  { %v80_v8 = vld [vmem:[#allocation5 + $0x58] sm:$0xff]  ;;  %v79_v9 = vld [vmem:[#allocation5 + $0x50] sm:$0xff]  ;;  %v78_v10 = vld [vmem:[#allocation5 + $0x48] sm:$0xff] }
   0xf   :  { %90 = vmatpush.msra.mxu1 %v85_v3  ;;  %v77_v11 = vld [vmem:[#allocation5 + $0x40] sm:$0xff]  ;;  %v76_v12 = vld [vmem:[#allocation5 + $0x38] sm:$0xff]  ;;  %v75_v13 = vld [vmem:[#allocation5 + $0x30] sm:$0xff] }
  0x10   :  { %v74_v14 = vld [vmem:[#allocation5 + $0x28] sm:$0xff]  ;;  %v73_v15 = vld [vmem:[#allocation5 + $0x20] sm:$0xff]  ;;  %v72_v16 = vld [vmem:[#allocation5 + $0x18] sm:$0xff] }
  0x11   :  { %91 = vmatpush.msra.mxu1 %v84_v4  ;;  %v71_v17 = vld [vmem:[#allocation5 + $0x10] sm:$0xff]  ;;  %v134_v18 = vld [vmem:[#allocation5 + $0x8] ss:$0 sm:$0xff] }
  0x12   :  { %v135_v22 = vld [vmem:[#allocation5 + $0x90] ss:$0 sm:$0xff] }
  0x13   :  { %92 = vmatpush.msra.mxu1 %v83_v5 }
  0x15   :  { %93 = vmatpush.msra.mxu1 %v82_v6 }
  0x17   :  { %94 = vmatpush.msra.mxu1 %v81_v7 }
  0x19   :  { %95 = vmatpush.msra.mxu1 %v80_v8 }
  0x1b   :  { %96 = vmatpush.msra.mxu1 %v79_v9 }
  0x1d   :  { %97 = vmatpush.msra.mxu1 %v78_v10 }
  0x1f   :  { %98 = vmatpush.msra.mxu1 %v77_v11 }
  0x21   :  { %99 = vmatpush.msra.mxu1 %v76_v12 }
  0x23   :  { %100 = vmatpush.msra.mxu1 %v75_v13 }
  0x25   :  { %101 = vmatpush.msra.mxu1 %v74_v14 }
  0x27   :  { %102 = vmatpush.msra.mxu1 %v73_v15 }
  0x29   :  { %103 = vmatpush.msra.mxu1 %v72_v16 }
  0x2b   :  { %104 = vmatpush.msra.mxu1 %v71_v17 }
  0x8a   :  { %v67_v19 = vpop.f32.mrf.mxu0 }
  0x8b   :  { %v68_v20 = vadd.f32 %v134_v18, %v67_v19 }
  0x8d   :  { %v70_v21 = vmax.f32 %v68_v20, 0.0 }
  0x8f   :  { %105 = vmatmul.f32.vlgmr.msra.gmra.mxu1 %v70_v21 }
 0x10c   :  { %v106_v23 = vpop.f32.mrf.mxu1 }
 0x10d   :  { %v107_v24 = vadd.f32 %v135_v22, %v106_v23 }
 0x10f   :  { %109 = vst [vmem:[#allocation7] sm:$0xff] %v107_v24 }
 0x110   :  { %120 = dma.vmem_to_hbm [thread:$0]  %s116_s1, 128, %s118_s23, [#allocation4]  }
 0x111   :  { %212 = dma.done.wait [#allocation4], 128  }
 0x112   :  { %213 = vsyncadd [#allocation4], 4294967168 }
 0x113   :  { %125 = vsyncpa [#allocation3], 1 }
 0x114   :  { %126 = vsyncpa [#allocation6], 1 }
 0x115   :  { %127 = vsyncpa [#allocation4], 1 }

</bundles_post_ra>
